<compile_context>
chip_gen: v5e
topology: v5e:2x2
jax: 0.10.0
libtpu: 0.0.40
codegen_flags: <defaults>
</compile_context>

<pallas_src>
import functools
import math

import jax
import jax.numpy as jnp
from jax.experimental import pallas as pl
from jax.experimental.pallas import tpu as pltpu


# ------------------------------ fused kernel --------------------------------

def _fused_attention_kernel(x_ref, w_qkv_ref, w_out_ref, b_out_ref, y_ref, *,
                            heads, dim_head, scale, mxu_dtype):
    """One grid step == one batch element. Everything VMEM-resident.

    x_ref:     (N, D)
    w_qkv_ref: (D, 3*H*Dh)   columns ordered [q | k | v], head-major inside
    w_out_ref: (H*Dh, D)
    b_out_ref: (1, D)
    y_ref:     (N, D)
    """
    f32 = jnp.float32
    H, Dh = heads, dim_head
    inner = H * Dh

    # ---- QKV projection: one lane-dense matmul, bf16 operands, f32 acc ----
    x = x_ref[...].astype(mxu_dtype)
    w_qkv = w_qkv_ref[...].astype(mxu_dtype)
    qkv = jnp.dot(x, w_qkv, preferred_element_type=f32)        # (N, 3*inner)

    q = qkv[:, 0 * inner:1 * inner]                            # (N, inner) f32
    k = qkv[:, 1 * inner:2 * inner]
    v = qkv[:, 2 * inner:3 * inner]

    # ---- per-head attention (H is small & static: unrolled in the trace) ----
    outs = []
    for h in range(H):
        q_h = q[:, h * Dh:(h + 1) * Dh].astype(mxu_dtype)
        k_h = k[:, h * Dh:(h + 1) * Dh].astype(mxu_dtype)
        v_h = v[:, h * Dh:(h + 1) * Dh].astype(mxu_dtype)
        # scores (N, N): contract the head dim, no materialized transpose.
        s = jax.lax.dot_general(q_h, k_h, (((1,), (1,)), ((), ())),
                                preferred_element_type=f32) * scale
        # numerically-stable softmax, kept in f32 on the VPU/EUP.
        s = s - jnp.max(s, axis=-1, keepdims=True)
        p = jnp.exp(s)
        denom = jnp.sum(p, axis=-1, keepdims=True)
        attn = p * pl.reciprocal(denom, approx=True)
        # TODO(synk): attention dropout omitted (module default dropout=0.0).
        outs.append(jnp.dot(attn.astype(mxu_dtype), v_h,
                            preferred_element_type=f32))
    o = jnp.concatenate(outs, axis=-1)                          # (N, inner)

    # ---- output projection: one (N, inner)@(inner, D) matmul + fused bias ----
    y = jnp.dot(o.astype(mxu_dtype), w_out_ref[...].astype(mxu_dtype),
                preferred_element_type=f32)
    y_ref[...] = (y + b_out_ref[...]).astype(y_ref.dtype)
    # TODO(synk): output dropout omitted (module default dropout=0.0).


@functools.lru_cache(maxsize=None)
def _fused_call(B, N, D, H, Dh, mxu_dtype_name):
    inner = H * Dh
    mxu_dtype = jnp.dtype(mxu_dtype_name).type
    kern = functools.partial(_fused_attention_kernel, heads=H, dim_head=Dh,
                             scale=float(Dh) ** -0.5, mxu_dtype=mxu_dtype)
    return pl.pallas_call(
        kern,
        out_shape=jax.ShapeDtypeStruct((B, N, D), jnp.float32),
        grid=(B,),
        in_specs=[
            # x: [B, N, D]  -> per-batch (N, D) block
            pl.BlockSpec((None, N, D), lambda b: (b, 0, 0)),
            # weights / bias: constant block index -> fetched once, resident
            pl.BlockSpec((D, 3 * inner), lambda b: (0, 0)),
            pl.BlockSpec((inner, D), lambda b: (0, 0)),
            pl.BlockSpec((1, D), lambda b: (0, 0)),
        ],
        out_specs=pl.BlockSpec((None, N, D), lambda b: (b, 0, 0)),
        compiler_params=pltpu.CompilerParams(
            # batch axis parallel -> both v7x TensorCores get work
            dimension_semantics=("parallel",),
            # explicit scoped-VMEM limit (covers v5e's low 16 MiB default)
            vmem_limit_bytes=32 * 1024 * 1024),
    )


# --------------------------------- module -----------------------------------

def init_params(key, dim, heads=8, dim_head=64):
    """Mirrors Attention.__init__ (nn.Linear default uniform init).

    Weights stored in x @ W layout: w_qkv columns are [q | k | v] blocks,
    each head-major — exactly the ordering torch's chunk(3) + rearrange
    'b n (h d) -> b h n d' implies, so the kernel never rearranges."""
    inner = heads * dim_head
    k1, k2, k3 = jax.random.split(key, 3)
    lim_qkv = 1.0 / math.sqrt(dim)
    lim_out = 1.0 / math.sqrt(inner)
    w_qkv = jax.random.uniform(k1, (dim, 3 * inner), jnp.float32,
                               -lim_qkv, lim_qkv)
    w_out = jax.random.uniform(k2, (inner, dim), jnp.float32,
                               -lim_out, lim_out)
    b_out = jax.random.uniform(k3, (dim,), jnp.float32, -lim_out, lim_out)
    return dict(w_qkv=w_qkv,                  # [D, 3*H*Dh]
                w_out=w_out,                  # [H*Dh, D]
                b_out=b_out.reshape(1, dim))  # [1, D]


def attention_forward(params, x, *, heads, dim_head,
                      mxu_dtype_name="bfloat16"):
    """x: [B, N, dim] -> [B, N, dim]. Matches Attention.forward (dropout=0)."""
    B, N, D = x.shape
    x = x.astype(jnp.float32)
    call = _fused_call(B, N, D, heads, dim_head, mxu_dtype_name)
    return call(x, params["w_qkv"], params["w_out"], params["b_out"])


def attention_reference(params, x, heads, dim_head, matmul_dtype=jnp.float32):
    """Plain-JAX reference. `matmul_dtype` lets us mirror the kernel's
    bf16-operand / f32-accumulate MXU numerics for a tight check."""
    P = jax.lax.Precision.HIGHEST
    f32 = jnp.float32
    w_qkv, w_out, b_out = params["w_qkv"], params["w_out"], params["b_out"]
    B, N, D = x.shape
    inner = heads * dim_head
    scale = float(dim_head) ** -0.5

    def mm(a, b):
        return jnp.matmul(a.astype(matmul_dtype), b.astype(matmul_dtype),
                          preferred_element_type=f32, precision=P)

    qkv = mm(x, w_qkv)                                     # (B, N, 3*inner)
    q, k, v = jnp.split(qkv, 3, axis=-1)

    def split_heads(t):
        return t.reshape(B, N, heads, dim_head).transpose(0, 2, 1, 3)

    q, k, v = map(split_heads, (q, k, v))                  # (B, H, N, Dh)
    s = mm(q, jnp.swapaxes(k, -1, -2)) * scale             # (B, H, N, N)
    attn = jax.nn.softmax(s, axis=-1)
    o = mm(attn, v)                                        # (B, H, N, Dh)
    o = o.transpose(0, 2, 1, 3).reshape(B, N, inner)
    return mm(o, w_out) + b_out


# ---------------------------------- main -------------------------------------

if __name__ == "__main__":
    B, N, DIM = 2, 8, 32            # batch=2, seq=8, hidden=32
    HEADS, DIM_HEAD = 8, 64         # module defaults

    key = jax.random.PRNGKey(0)
    kp, kx = jax.random.split(key)
    params = init_params(kp, DIM, HEADS, DIM_HEAD)
    x = jax.random.normal(kx, (B, N, DIM), jnp.float32)

    fwd = jax.jit(attention_forward, static_argnames=("heads", "dim_head",
                                                      "mxu_dtype_name"))
    out = fwd(params, x, heads=HEADS, dim_head=DIM_HEAD)
    jax.block_until_ready(out)
    assert out.shape == (B, N, DIM), out.shape

    # Tight check vs. a reference that mirrors the kernel's bf16-operand /
    # f32-accumulate MXU numerics (softmax in f32 in both).
    ref_matched = attention_reference(params, x, HEADS, DIM_HEAD,
                                      matmul_dtype=jnp.bfloat16)
    assert bool(jnp.allclose(out, ref_matched, rtol=1e-2, atol=1e-2)), (
        float(jnp.max(jnp.abs(out - ref_matched))))

    # Fidelity check vs. the original module's full-f32 math (tolerance sized
    # for the expected bf16 operand rounding).
    ref_f32 = attention_reference(params, x, HEADS, DIM_HEAD,
                                  matmul_dtype=jnp.float32)
    assert bool(jnp.allclose(out, ref_f32, rtol=3e-2, atol=3e-2)), (
        float(jnp.max(jnp.abs(out - ref_f32))))

    print("KERNEL_OK")
</pallas_src>

<mosaic_0001>
module attributes {stable_mosaic.version = 11 : i64} {
  func.func @_fused_attention_kernel(%arg0: i32, %arg1: memref<1x8x32xf32, #tpu.memory_space<vmem>>, %arg2: memref<32x1536xf32, #tpu.memory_space<vmem>>, %arg3: memref<512x32xf32, #tpu.memory_space<vmem>>, %arg4: memref<1x32xf32, #tpu.memory_space<vmem>>, %arg5: memref<1x8x32xf32, #tpu.memory_space<vmem>>) attributes {dimension_semantics = [#tpu.dimension_semantics<parallel>], iteration_bounds = array<i64: 2>, scalar_prefetch = 0 : i64, scratch_operands = 0 : i64, tpu.core_type = #tpu.core_type<tc>, window_params = [{transform_indices = @transform_0, window_bounds = array<i64: 1, 8, 32>}, {pipeline_mode = #tpu.pipeline_mode<synchronous>, transform_indices = @transform_1, window_bounds = array<i64: 32, 1536>}, {pipeline_mode = #tpu.pipeline_mode<synchronous>, transform_indices = @transform_2, window_bounds = array<i64: 512, 32>}, {pipeline_mode = #tpu.pipeline_mode<synchronous>, transform_indices = @transform_3, window_bounds = array<i64: 1, 32>}, {transform_indices = @transform_4, window_bounds = array<i64: 1, 8, 32>}]} {
    %c0 = arith.constant 0 : index
    %c0_0 = arith.constant 0 : index
    %c0_1 = arith.constant 0 : index
    %0 = vector.load %arg1[%c0, %c0_0, %c0_1] : memref<1x8x32xf32, #tpu.memory_space<vmem>>, vector<1x8x32xf32>
    %1 = vector.shape_cast %0 : vector<1x8x32xf32> to vector<8x32xf32>
    %2 = arith.truncf %1 : vector<8x32xf32> to vector<8x32xbf16>
    %c0_2 = arith.constant 0 : index
    %c0_3 = arith.constant 0 : index
    %3 = vector.load %arg2[%c0_2, %c0_3] : memref<32x1536xf32, #tpu.memory_space<vmem>>, vector<32x1536xf32>
    %4 = arith.truncf %3 : vector<32x1536xf32> to vector<32x1536xbf16>
    %cst = arith.constant dense<0.000000e+00> : vector<8x1536xf32>
    %5 = tpu.matmul %2, %4, %cst {dimension_numbers = #tpu.dot_dimension_numbers<[1], [0], [0], [1], [0, 0, 1, 1], [], []>} : vector<8x32xbf16>, vector<32x1536xbf16>, vector<8x1536xf32> -> vector<8x1536xf32>
    %6 = vector.extract_strided_slice %5 {offsets = [0, 0], sizes = [8, 512], strides = [1, 1]} : vector<8x1536xf32> to vector<8x512xf32>
    %7 = vector.extract_strided_slice %5 {offsets = [0, 512], sizes = [8, 512], strides = [1, 1]} : vector<8x1536xf32> to vector<8x512xf32>
    %8 = vector.extract_strided_slice %5 {offsets = [0, 1024], sizes = [8, 512], strides = [1, 1]} : vector<8x1536xf32> to vector<8x512xf32>
    %9 = vector.extract_strided_slice %6 {offsets = [0, 0], sizes = [8, 64], strides = [1, 1]} : vector<8x512xf32> to vector<8x64xf32>
    %10 = arith.truncf %9 : vector<8x64xf32> to vector<8x64xbf16>
    %11 = vector.extract_strided_slice %7 {offsets = [0, 0], sizes = [8, 64], strides = [1, 1]} : vector<8x512xf32> to vector<8x64xf32>
    %12 = arith.truncf %11 : vector<8x64xf32> to vector<8x64xbf16>
    %13 = vector.extract_strided_slice %8 {offsets = [0, 0], sizes = [8, 64], strides = [1, 1]} : vector<8x512xf32> to vector<8x64xf32>
    %14 = arith.truncf %13 : vector<8x64xf32> to vector<8x64xbf16>
    %cst_4 = arith.constant dense<0.000000e+00> : vector<8x8xf32>
    %15 = tpu.matmul %10, %12, %cst_4 {dimension_numbers = #tpu.dot_dimension_numbers<[1], [1], [0], [0], [0, 0, 1, 0], [], []>} : vector<8x64xbf16>, vector<8x64xbf16>, vector<8x8xf32> -> vector<8x8xf32>
    %cst_5 = arith.constant 1.250000e-01 : f32
    %16 = vector.broadcast %cst_5 : f32 to vector<8x8xf32>
    %17 = arith.mulf %15, %16 : vector<8x8xf32>
    %cst_6 = arith.constant dense<0xFF800000> : vector<8xf32>
    %18 = vector.multi_reduction <maximumf>, %17, %cst_6 [1] : vector<8x8xf32> to vector<8xf32>
    %19 = vector.shape_cast %18 : vector<8xf32> to vector<8x1xf32>
    %20 = vector.broadcast %19 : vector<8x1xf32> to vector<8x8xf32>
    %21 = arith.subf %17, %20 : vector<8x8xf32>
    %22 = math.exp %21 : vector<8x8xf32>
    %cst_7 = arith.constant dense<0.000000e+00> : vector<8xf32>
    %23 = vector.multi_reduction <add>, %22, %cst_7 [1] : vector<8x8xf32> to vector<8xf32>
    %24 = vector.shape_cast %23 : vector<8xf32> to vector<8x1xf32>
    %25 = tpu.reciprocal %24 {approx = true} : vector<8x1xf32> -> vector<8x1xf32>
    %26 = vector.broadcast %25 : vector<8x1xf32> to vector<8x8xf32>
    %27 = arith.mulf %22, %26 : vector<8x8xf32>
    %28 = arith.truncf %27 : vector<8x8xf32> to vector<8x8xbf16>
    %cst_8 = arith.constant dense<0.000000e+00> : vector<8x64xf32>
    %29 = tpu.matmul %28, %14, %cst_8 {dimension_numbers = #tpu.dot_dimension_numbers<[1], [0], [0], [1], [0, 0, 1, 1], [], []>} : vector<8x8xbf16>, vector<8x64xbf16>, vector<8x64xf32> -> vector<8x64xf32>
    %30 = vector.extract_strided_slice %6 {offsets = [0, 64], sizes = [8, 64], strides = [1, 1]} : vector<8x512xf32> to vector<8x64xf32>
    %31 = arith.truncf %30 : vector<8x64xf32> to vector<8x64xbf16>
    %32 = vector.extract_strided_slice %7 {offsets = [0, 64], sizes = [8, 64], strides = [1, 1]} : vector<8x512xf32> to vector<8x64xf32>
    %33 = arith.truncf %32 : vector<8x64xf32> to vector<8x64xbf16>
    %34 = vector.extract_strided_slice %8 {offsets = [0, 64], sizes = [8, 64], strides = [1, 1]} : vector<8x512xf32> to vector<8x64xf32>
    %35 = arith.truncf %34 : vector<8x64xf32> to vector<8x64xbf16>
    %cst_9 = arith.constant dense<0.000000e+00> : vector<8x8xf32>
    %36 = tpu.matmul %31, %33, %cst_9 {dimension_numbers = #tpu.dot_dimension_numbers<[1], [1], [0], [0], [0, 0, 1, 0], [], []>} : vector<8x64xbf16>, vector<8x64xbf16>, vector<8x8xf32> -> vector<8x8xf32>
    %cst_10 = arith.constant 1.250000e-01 : f32
    %37 = vector.broadcast %cst_10 : f32 to vector<8x8xf32>
    %38 = arith.mulf %36, %37 : vector<8x8xf32>
    %cst_11 = arith.constant dense<0xFF800000> : vector<8xf32>
    %39 = vector.multi_reduction <maximumf>, %38, %cst_11 [1] : vector<8x8xf32> to vector<8xf32>
    %40 = vector.shape_cast %39 : vector<8xf32> to vector<8x1xf32>
    %41 = vector.broadcast %40 : vector<8x1xf32> to vector<8x8xf32>
    %42 = arith.subf %38, %41 : vector<8x8xf32>
    %43 = math.exp %42 : vector<8x8xf32>
    %cst_12 = arith.constant dense<0.000000e+00> : vector<8xf32>
    %44 = vector.multi_reduction <add>, %43, %cst_12 [1] : vector<8x8xf32> to vector<8xf32>
    %45 = vector.shape_cast %44 : vector<8xf32> to vector<8x1xf32>
    %46 = tpu.reciprocal %45 {approx = true} : vector<8x1xf32> -> vector<8x1xf32>
    %47 = vector.broadcast %46 : vector<8x1xf32> to vector<8x8xf32>
    %48 = arith.mulf %43, %47 : vector<8x8xf32>
    %49 = arith.truncf %48 : vector<8x8xf32> to vector<8x8xbf16>
    %cst_13 = arith.constant dense<0.000000e+00> : vector<8x64xf32>
    %50 = tpu.matmul %49, %35, %cst_13 {dimension_numbers = #tpu.dot_dimension_numbers<[1], [0], [0], [1], [0, 0, 1, 1], [], []>} : vector<8x8xbf16>, vector<8x64xbf16>, vector<8x64xf32> -> vector<8x64xf32>
    %51 = vector.extract_strided_slice %6 {offsets = [0, 128], sizes = [8, 64], strides = [1, 1]} : vector<8x512xf32> to vector<8x64xf32>
    %52 = arith.truncf %51 : vector<8x64xf32> to vector<8x64xbf16>
    %53 = vector.extract_strided_slice %7 {offsets = [0, 128], sizes = [8, 64], strides = [1, 1]} : vector<8x512xf32> to vector<8x64xf32>
    %54 = arith.truncf %53 : vector<8x64xf32> to vector<8x64xbf16>
    %55 = vector.extract_strided_slice %8 {offsets = [0, 128], sizes = [8, 64], strides = [1, 1]} : vector<8x512xf32> to vector<8x64xf32>
    %56 = arith.truncf %55 : vector<8x64xf32> to vector<8x64xbf16>
    %cst_14 = arith.constant dense<0.000000e+00> : vector<8x8xf32>
    %57 = tpu.matmul %52, %54, %cst_14 {dimension_numbers = #tpu.dot_dimension_numbers<[1], [1], [0], [0], [0, 0, 1, 0], [], []>} : vector<8x64xbf16>, vector<8x64xbf16>, vector<8x8xf32> -> vector<8x8xf32>
    %cst_15 = arith.constant 1.250000e-01 : f32
    %58 = vector.broadcast %cst_15 : f32 to vector<8x8xf32>
    %59 = arith.mulf %57, %58 : vector<8x8xf32>
    %cst_16 = arith.constant dense<0xFF800000> : vector<8xf32>
    %60 = vector.multi_reduction <maximumf>, %59, %cst_16 [1] : vector<8x8xf32> to vector<8xf32>
    %61 = vector.shape_cast %60 : vector<8xf32> to vector<8x1xf32>
    %62 = vector.broadcast %61 : vector<8x1xf32> to vector<8x8xf32>
    %63 = arith.subf %59, %62 : vector<8x8xf32>
    %64 = math.exp %63 : vector<8x8xf32>
    %cst_17 = arith.constant dense<0.000000e+00> : vector<8xf32>
    %65 = vector.multi_reduction <add>, %64, %cst_17 [1] : vector<8x8xf32> to vector<8xf32>
    %66 = vector.shape_cast %65 : vector<8xf32> to vector<8x1xf32>
    %67 = tpu.reciprocal %66 {approx = true} : vector<8x1xf32> -> vector<8x1xf32>
    %68 = vector.broadcast %67 : vector<8x1xf32> to vector<8x8xf32>
    %69 = arith.mulf %64, %68 : vector<8x8xf32>
    %70 = arith.truncf %69 : vector<8x8xf32> to vector<8x8xbf16>
    %cst_18 = arith.constant dense<0.000000e+00> : vector<8x64xf32>
    %71 = tpu.matmul %70, %56, %cst_18 {dimension_numbers = #tpu.dot_dimension_numbers<[1], [0], [0], [1], [0, 0, 1, 1], [], []>} : vector<8x8xbf16>, vector<8x64xbf16>, vector<8x64xf32> -> vector<8x64xf32>
    %72 = vector.extract_strided_slice %6 {offsets = [0, 192], sizes = [8, 64], strides = [1, 1]} : vector<8x512xf32> to vector<8x64xf32>
    %73 = arith.truncf %72 : vector<8x64xf32> to vector<8x64xbf16>
    %74 = vector.extract_strided_slice %7 {offsets = [0, 192], sizes = [8, 64], strides = [1, 1]} : vector<8x512xf32> to vector<8x64xf32>
    %75 = arith.truncf %74 : vector<8x64xf32> to vector<8x64xbf16>
    %76 = vector.extract_strided_slice %8 {offsets = [0, 192], sizes = [8, 64], strides = [1, 1]} : vector<8x512xf32> to vector<8x64xf32>
    %77 = arith.truncf %76 : vector<8x64xf32> to vector<8x64xbf16>
    %cst_19 = arith.constant dense<0.000000e+00> : vector<8x8xf32>
    %78 = tpu.matmul %73, %75, %cst_19 {dimension_numbers = #tpu.dot_dimension_numbers<[1], [1], [0], [0], [0, 0, 1, 0], [], []>} : vector<8x64xbf16>, vector<8x64xbf16>, vector<8x8xf32> -> vector<8x8xf32>
    %cst_20 = arith.constant 1.250000e-01 : f32
    %79 = vector.broadcast %cst_20 : f32 to vector<8x8xf32>
    %80 = arith.mulf %78, %79 : vector<8x8xf32>
    %cst_21 = arith.constant dense<0xFF800000> : vector<8xf32>
    %81 = vector.multi_reduction <maximumf>, %80, %cst_21 [1] : vector<8x8xf32> to vector<8xf32>
    %82 = vector.shape_cast %81 : vector<8xf32> to vector<8x1xf32>
    %83 = vector.broadcast %82 : vector<8x1xf32> to vector<8x8xf32>
    %84 = arith.subf %80, %83 : vector<8x8xf32>
    %85 = math.exp %84 : vector<8x8xf32>
    %cst_22 = arith.constant dense<0.000000e+00> : vector<8xf32>
    %86 = vector.multi_reduction <add>, %85, %cst_22 [1] : vector<8x8xf32> to vector<8xf32>
    %87 = vector.shape_cast %86 : vector<8xf32> to vector<8x1xf32>
    %88 = tpu.reciprocal %87 {approx = true} : vector<8x1xf32> -> vector<8x1xf32>
    %89 = vector.broadcast %88 : vector<8x1xf32> to vector<8x8xf32>
    %90 = arith.mulf %85, %89 : vector<8x8xf32>
    %91 = arith.truncf %90 : vector<8x8xf32> to vector<8x8xbf16>
    %cst_23 = arith.constant dense<0.000000e+00> : vector<8x64xf32>
    %92 = tpu.matmul %91, %77, %cst_23 {dimension_numbers = #tpu.dot_dimension_numbers<[1], [0], [0], [1], [0, 0, 1, 1], [], []>} : vector<8x8xbf16>, vector<8x64xbf16>, vector<8x64xf32> -> vector<8x64xf32>
    %93 = vector.extract_strided_slice %6 {offsets = [0, 256], sizes = [8, 64], strides = [1, 1]} : vector<8x512xf32> to vector<8x64xf32>
    %94 = arith.truncf %93 : vector<8x64xf32> to vector<8x64xbf16>
    %95 = vector.extract_strided_slice %7 {offsets = [0, 256], sizes = [8, 64], strides = [1, 1]} : vector<8x512xf32> to vector<8x64xf32>
    %96 = arith.truncf %95 : vector<8x64xf32> to vector<8x64xbf16>
    %97 = vector.extract_strided_slice %8 {offsets = [0, 256], sizes = [8, 64], strides = [1, 1]} : vector<8x512xf32> to vector<8x64xf32>
    %98 = arith.truncf %97 : vector<8x64xf32> to vector<8x64xbf16>
    %cst_24 = arith.constant dense<0.000000e+00> : vector<8x8xf32>
    %99 = tpu.matmul %94, %96, %cst_24 {dimension_numbers = #tpu.dot_dimension_numbers<[1], [1], [0], [0], [0, 0, 1, 0], [], []>} : vector<8x64xbf16>, vector<8x64xbf16>, vector<8x8xf32> -> vector<8x8xf32>
    %cst_25 = arith.constant 1.250000e-01 : f32
    %100 = vector.broadcast %cst_25 : f32 to vector<8x8xf32>
    %101 = arith.mulf %99, %100 : vector<8x8xf32>
    %cst_26 = arith.constant dense<0xFF800000> : vector<8xf32>
    %102 = vector.multi_reduction <maximumf>, %101, %cst_26 [1] : vector<8x8xf32> to vector<8xf32>
    %103 = vector.shape_cast %102 : vector<8xf32> to vector<8x1xf32>
    %104 = vector.broadcast %103 : vector<8x1xf32> to vector<8x8xf32>
    %105 = arith.subf %101, %104 : vector<8x8xf32>
    %106 = math.exp %105 : vector<8x8xf32>
    %cst_27 = arith.constant dense<0.000000e+00> : vector<8xf32>
    %107 = vector.multi_reduction <add>, %106, %cst_27 [1] : vector<8x8xf32> to vector<8xf32>
    %108 = vector.shape_cast %107 : vector<8xf32> to vector<8x1xf32>
    %109 = tpu.reciprocal %108 {approx = true} : vector<8x1xf32> -> vector<8x1xf32>
    %110 = vector.broadcast %109 : vector<8x1xf32> to vector<8x8xf32>
    %111 = arith.mulf %106, %110 : vector<8x8xf32>
    %112 = arith.truncf %111 : vector<8x8xf32> to vector<8x8xbf16>
    %cst_28 = arith.constant dense<0.000000e+00> : vector<8x64xf32>
    %113 = tpu.matmul %112, %98, %cst_28 {dimension_numbers = #tpu.dot_dimension_numbers<[1], [0], [0], [1], [0, 0, 1, 1], [], []>} : vector<8x8xbf16>, vector<8x64xbf16>, vector<8x64xf32> -> vector<8x64xf32>
    %114 = vector.extract_strided_slice %6 {offsets = [0, 320], sizes = [8, 64], strides = [1, 1]} : vector<8x512xf32> to vector<8x64xf32>
    %115 = arith.truncf %114 : vector<8x64xf32> to vector<8x64xbf16>
    %116 = vector.extract_strided_slice %7 {offsets = [0, 320], sizes = [8, 64], strides = [1, 1]} : vector<8x512xf32> to vector<8x64xf32>
    %117 = arith.truncf %116 : vector<8x64xf32> to vector<8x64xbf16>
    %118 = vector.extract_strided_slice %8 {offsets = [0, 320], sizes = [8, 64], strides = [1, 1]} : vector<8x512xf32> to vector<8x64xf32>
    %119 = arith.truncf %118 : vector<8x64xf32> to vector<8x64xbf16>
    %cst_29 = arith.constant dense<0.000000e+00> : vector<8x8xf32>
    %120 = tpu.matmul %115, %117, %cst_29 {dimension_numbers = #tpu.dot_dimension_numbers<[1], [1], [0], [0], [0, 0, 1, 0], [], []>} : vector<8x64xbf16>, vector<8x64xbf16>, vector<8x8xf32> -> vector<8x8xf32>
    %cst_30 = arith.constant 1.250000e-01 : f32
    %121 = vector.broadcast %cst_30 : f32 to vector<8x8xf32>
    %122 = arith.mulf %120, %121 : vector<8x8xf32>
    %cst_31 = arith.constant dense<0xFF800000> : vector<8xf32>
    %123 = vector.multi_reduction <maximumf>, %122, %cst_31 [1] : vector<8x8xf32> to vector<8xf32>
    %124 = vector.shape_cast %123 : vector<8xf32> to vector<8x1xf32>
    %125 = vector.broadcast %124 : vector<8x1xf32> to vector<8x8xf32>
    %126 = arith.subf %122, %125 : vector<8x8xf32>
    %127 = math.exp %126 : vector<8x8xf32>
    %cst_32 = arith.constant dense<0.000000e+00> : vector<8xf32>
    %128 = vector.multi_reduction <add>, %127, %cst_32 [1] : vector<8x8xf32> to vector<8xf32>
    %129 = vector.shape_cast %128 : vector<8xf32> to vector<8x1xf32>
    %130 = tpu.reciprocal %129 {approx = true} : vector<8x1xf32> -> vector<8x1xf32>
    %131 = vector.broadcast %130 : vector<8x1xf32> to vector<8x8xf32>
    %132 = arith.mulf %127, %131 : vector<8x8xf32>
    %133 = arith.truncf %132 : vector<8x8xf32> to vector<8x8xbf16>
    %cst_33 = arith.constant dense<0.000000e+00> : vector<8x64xf32>
    %134 = tpu.matmul %133, %119, %cst_33 {dimension_numbers = #tpu.dot_dimension_numbers<[1], [0], [0], [1], [0, 0, 1, 1], [], []>} : vector<8x8xbf16>, vector<8x64xbf16>, vector<8x64xf32> -> vector<8x64xf32>
    %135 = vector.extract_strided_slice %6 {offsets = [0, 384], sizes = [8, 64], strides = [1, 1]} : vector<8x512xf32> to vector<8x64xf32>
    %136 = arith.truncf %135 : vector<8x64xf32> to vector<8x64xbf16>
    %137 = vector.extract_strided_slice %7 {offsets = [0, 384], sizes = [8, 64], strides = [1, 1]} : vector<8x512xf32> to vector<8x64xf32>
    %138 = arith.truncf %137 : vector<8x64xf32> to vector<8x64xbf16>
    %139 = vector.extract_strided_slice %8 {offsets = [0, 384], sizes = [8, 64], strides = [1, 1]} : vector<8x512xf32> to vector<8x64xf32>
    %140 = arith.truncf %139 : vector<8x64xf32> to vector<8x64xbf16>
    %cst_34 = arith.constant dense<0.000000e+00> : vector<8x8xf32>
    %141 = tpu.matmul %136, %138, %cst_34 {dimension_numbers = #tpu.dot_dimension_numbers<[1], [1], [0], [0], [0, 0, 1, 0], [], []>} : vector<8x64xbf16>, vector<8x64xbf16>, vector<8x8xf32> -> vector<8x8xf32>
    %cst_35 = arith.constant 1.250000e-01 : f32
    %142 = vector.broadcast %cst_35 : f32 to vector<8x8xf32>
    %143 = arith.mulf %141, %142 : vector<8x8xf32>
    %cst_36 = arith.constant dense<0xFF800000> : vector<8xf32>
    %144 = vector.multi_reduction <maximumf>, %143, %cst_36 [1] : vector<8x8xf32> to vector<8xf32>
    %145 = vector.shape_cast %144 : vector<8xf32> to vector<8x1xf32>
    %146 = vector.broadcast %145 : vector<8x1xf32> to vector<8x8xf32>
    %147 = arith.subf %143, %146 : vector<8x8xf32>
    %148 = math.exp %147 : vector<8x8xf32>
    %cst_37 = arith.constant dense<0.000000e+00> : vector<8xf32>
    %149 = vector.multi_reduction <add>, %148, %cst_37 [1] : vector<8x8xf32> to vector<8xf32>
    %150 = vector.shape_cast %149 : vector<8xf32> to vector<8x1xf32>
    %151 = tpu.reciprocal %150 {approx = true} : vector<8x1xf32> -> vector<8x1xf32>
    %152 = vector.broadcast %151 : vector<8x1xf32> to vector<8x8xf32>
    %153 = arith.mulf %148, %152 : vector<8x8xf32>
    %154 = arith.truncf %153 : vector<8x8xf32> to vector<8x8xbf16>
    %cst_38 = arith.constant dense<0.000000e+00> : vector<8x64xf32>
    %155 = tpu.matmul %154, %140, %cst_38 {dimension_numbers = #tpu.dot_dimension_numbers<[1], [0], [0], [1], [0, 0, 1, 1], [], []>} : vector<8x8xbf16>, vector<8x64xbf16>, vector<8x64xf32> -> vector<8x64xf32>
    %156 = vector.extract_strided_slice %6 {offsets = [0, 448], sizes = [8, 64], strides = [1, 1]} : vector<8x512xf32> to vector<8x64xf32>
    %157 = arith.truncf %156 : vector<8x64xf32> to vector<8x64xbf16>
    %158 = vector.extract_strided_slice %7 {offsets = [0, 448], sizes = [8, 64], strides = [1, 1]} : vector<8x512xf32> to vector<8x64xf32>
    %159 = arith.truncf %158 : vector<8x64xf32> to vector<8x64xbf16>
    %160 = vector.extract_strided_slice %8 {offsets = [0, 448], sizes = [8, 64], strides = [1, 1]} : vector<8x512xf32> to vector<8x64xf32>
    %161 = arith.truncf %160 : vector<8x64xf32> to vector<8x64xbf16>
    %cst_39 = arith.constant dense<0.000000e+00> : vector<8x8xf32>
    %162 = tpu.matmul %157, %159, %cst_39 {dimension_numbers = #tpu.dot_dimension_numbers<[1], [1], [0], [0], [0, 0, 1, 0], [], []>} : vector<8x64xbf16>, vector<8x64xbf16>, vector<8x8xf32> -> vector<8x8xf32>
    %cst_40 = arith.constant 1.250000e-01 : f32
    %163 = vector.broadcast %cst_40 : f32 to vector<8x8xf32>
    %164 = arith.mulf %162, %163 : vector<8x8xf32>
    %cst_41 = arith.constant dense<0xFF800000> : vector<8xf32>
    %165 = vector.multi_reduction <maximumf>, %164, %cst_41 [1] : vector<8x8xf32> to vector<8xf32>
    %166 = vector.shape_cast %165 : vector<8xf32> to vector<8x1xf32>
    %167 = vector.broadcast %166 : vector<8x1xf32> to vector<8x8xf32>
    %168 = arith.subf %164, %167 : vector<8x8xf32>
    %169 = math.exp %168 : vector<8x8xf32>
    %cst_42 = arith.constant dense<0.000000e+00> : vector<8xf32>
    %170 = vector.multi_reduction <add>, %169, %cst_42 [1] : vector<8x8xf32> to vector<8xf32>
    %171 = vector.shape_cast %170 : vector<8xf32> to vector<8x1xf32>
    %172 = tpu.reciprocal %171 {approx = true} : vector<8x1xf32> -> vector<8x1xf32>
    %173 = vector.broadcast %172 : vector<8x1xf32> to vector<8x8xf32>
    %174 = arith.mulf %169, %173 : vector<8x8xf32>
    %175 = arith.truncf %174 : vector<8x8xf32> to vector<8x8xbf16>
    %cst_43 = arith.constant dense<0.000000e+00> : vector<8x64xf32>
    %176 = tpu.matmul %175, %161, %cst_43 {dimension_numbers = #tpu.dot_dimension_numbers<[1], [0], [0], [1], [0, 0, 1, 1], [], []>} : vector<8x8xbf16>, vector<8x64xbf16>, vector<8x64xf32> -> vector<8x64xf32>
    %177 = tpu.concatenate %29, %50, %71, %92, %113, %134, %155, %176 in 1 : vector<8x64xf32>, vector<8x64xf32>, vector<8x64xf32>, vector<8x64xf32>, vector<8x64xf32>, vector<8x64xf32>, vector<8x64xf32>, vector<8x64xf32> -> vector<8x512xf32>
    %178 = arith.truncf %177 : vector<8x512xf32> to vector<8x512xbf16>
    %c0_44 = arith.constant 0 : index
    %c0_45 = arith.constant 0 : index
    %179 = vector.load %arg3[%c0_44, %c0_45] : memref<512x32xf32, #tpu.memory_space<vmem>>, vector<512x32xf32>
    %180 = arith.truncf %179 : vector<512x32xf32> to vector<512x32xbf16>
    %cst_46 = arith.constant dense<0.000000e+00> : vector<8x32xf32>
    %181 = tpu.matmul %178, %180, %cst_46 {dimension_numbers = #tpu.dot_dimension_numbers<[1], [0], [0], [1], [0, 0, 1, 1], [], []>} : vector<8x512xbf16>, vector<512x32xbf16>, vector<8x32xf32> -> vector<8x32xf32>
    %c0_47 = arith.constant 0 : index
    %c0_48 = arith.constant 0 : index
    %182 = vector.load %arg4[%c0_47, %c0_48] : memref<1x32xf32, #tpu.memory_space<vmem>>, vector<1x32xf32>
    %183 = vector.broadcast %182 : vector<1x32xf32> to vector<8x32xf32>
    %184 = arith.addf %181, %183 : vector<8x32xf32>
    %c0_49 = arith.constant 0 : index
    %c0_50 = arith.constant 0 : index
    %c0_51 = arith.constant 0 : index
    %185 = vector.load %arg5[%c0_49, %c0_50, %c0_51] : memref<1x8x32xf32, #tpu.memory_space<vmem>>, vector<1x8x32xf32>
    %186 = vector.shape_cast %185 : vector<1x8x32xf32> to vector<8x32xf32>
    %187 = vector.shape_cast %184 : vector<8x32xf32> to vector<1x8x32xf32>
    tpu.vector_store %arg5[%c0_49, %c0_50, %c0_51], %187 {strides = array<i32>} : memref<1x8x32xf32, #tpu.memory_space<vmem>>, vector<1x8x32xf32>,
    return
  }
  func.func @transform_0(%arg0: i32) -> (i32, i32, i32) {
    %c0_i32 = arith.constant 0 : i32
    %c0_i32_0 = arith.constant 0 : i32
    %c0_i32_1 = arith.constant 0 : i32
    return %arg0, %c0_i32, %c0_i32_0 : i32, i32, i32
  }
  func.func @transform_1(%arg0: i32) -> (i32, i32) {
    %c0_i32 = arith.constant 0 : i32
    %c0_i32_0 = arith.constant 0 : i32
    %c0_i32_1 = arith.constant 0 : i32
    return %c0_i32, %c0_i32_0 : i32, i32
  }
  func.func @transform_2(%arg0: i32) -> (i32, i32) {
    %c0_i32 = arith.constant 0 : i32
    %c0_i32_0 = arith.constant 0 : i32
    %c0_i32_1 = arith.constant 0 : i32
    return %c0_i32, %c0_i32_0 : i32, i32
  }
  func.func @transform_3(%arg0: i32) -> (i32, i32) {
    %c0_i32 = arith.constant 0 : i32
    %c0_i32_0 = arith.constant 0 : i32
    %c0_i32_1 = arith.constant 0 : i32
    return %c0_i32, %c0_i32_0 : i32, i32
  }
  func.func @transform_4(%arg0: i32) -> (i32, i32, i32) {
    %c0_i32 = arith.constant 0 : i32
    %c0_i32_0 = arith.constant 0 : i32
    %c0_i32_1 = arith.constant 0 : i32
    return %arg0, %c0_i32, %c0_i32_0 : i32, i32, i32
  }
}

</mosaic_0001>

<bundles_post_ra>
// kernel: attention_forward.1
= control target key start
LH: loop header
LB: loop body
LE: loop exit
PB: predicated region body
PF: predicated region fallthrough
CT: control target
= control target key end

     0   :  { %9 = vsyncpa [#allocation3], 0  ;;  %s1890_s0 = inlined_call_operand.vmem [shape: f32[2,8,32], index: 0, kind: input, shape index: {}]   ;;  %s1891_s1 = inlined_call_operand.vmem [shape: f32[32,1536], index: 1, kind: input, shape index: {}]   ;;  %s1892_s2 = inlined_call_operand.vmem [shape: f32[512,32], index: 2, kind: input, shape index: {}]   ;;  %s1893_s3 = inlined_call_operand.vmem [shape: f32[1,32], index: 3, kind: input, shape index: {}]   ;;  %s1894_s4 = inlined_call_operand.hbm [shape: f32[2,8,32], index: 4, kind: output, shape index: {}]  }
   0x1   :  { %11 = vsyncpa [#allocation3 + $0x1], 0  ;;  %s1350_s15 = smov 0   ;;  %s1352_s16 = smov 0  }
   0x2   :  { %s1354_s17 = smov 0   ;;  %s1356_s18 = smov 0  }
   0x3 LB: > { %s1371_s19 = sadd.s32 4294967295, %s1322_s18   ;;  %s1139_s20 = sadd.s32 4294967294, %s1322_s18   ;;  %s1322_s18 = sphi %s1356_s18, %s1900_s18   ;;  %s1318_s17 = sphi %s1354_s17, %s1899_s17   ;;  %s1314_s16 = sphi %s1352_s16, %s1898_s16   ;;  %s1310_s15 = sphi %s1350_s15, %s1897_s15  }
   0x4   : > { %s1375_s21 = sadd.s32 1, %s1322_s18   ;;  %s113_s22 = sadd.s32 1, %s1318_s17 }
   0x5   : > { %s110_s23 = ssub.s32 %s1322_s18, %s1375_s21  ;;  %p123_p0 = scmp.ne.s32.totalorder %s1318_s17, %s1314_s16 }
   0x6   : > { %p111_p1 = scmp.eq.s32.totalorder %s110_s23, 0  ;;  %p124_p2 = scmp.eq.s32.totalorder %s1371_s19, 1 }
   0x7   : > { %p129_p3 = scmp.ne.s32.totalorder %s1314_s16, %s1310_s15  ;;  %p130_p4 = scmp.eq.s32.totalorder %s1139_s20, 1 }
   0x8   : > { %s1386_s24 = scalar_select %p111_p1, %s1318_s17, %s113_s22  }
   0x9   : > { %p1388_p5 = por %p124_p2, %p123_p0  ;;  %p1392_p6 = por %p130_p4, %p129_p3 }
   0xa   : > { %p1142_p7 = scmp.ge.s32.totalorder %s1322_s18, 1  ;;  %p164_p8 = scmp.lt.s32.totalorder %s1322_s18, 3 }
   0xc   : > { %p165_p9 = pnand %p1142_p7, %p164_p8 }
   0xd   : > { %p189_p10 = scmp.lt.s32.totalorder (!%p165_p9), %s1371_s19, 1  ;;  %s186_s14 = sand.u32 (!%p165_p9), 1, %s1314_s16  }
   0xe   : > { %168 = sbr.rel (%p165_p9) target bundleno = 1129 (0x469), region = 36  ;;  %s1143_s20 = sshll.u32 (!%p165_p9), %s186_s14, 3 }
   0xf   : > { %s1174_s22 = sshll.u32 (!%p165_p9), %s1371_s19, 3  ;;  %s188_s29 = scalar_lea.vmem (!%p165_p9), [#allocation2], %s1143_s20 }
  0x10   : > { %s1065_s5 = scalar_lea.sflag (!%p165_p9), [#allocation3], %s186_s14  ;;  %s1280_s10 = scalar_lea.hbm (!%p165_p9), %s1894_s4, 16 }
  0x13   : > { %v220_v0 = vld [vmem:[%s1891_s1 + $0xc0] sm:$0xff]  ;;  %v221_v2 = vld [vmem:[%s1891_s1 + $0xc8] sm:$0xff]  ;;  %s190_s23 = scalar_select %p189_p10, %s1371_s19, 1  ;;  %v222_v22 = vld [vmem:[%s1891_s1 + $0xd0] sm:$0xff]  ;;  %vm268_vm0 = vcmask 261120   ;;  %vm431_vm1 = vcmask 523264  }
  0x14   : > { %v232_v1 = vld [vmem:[%s1891_s1 + $0x120] sm:$0xff]  ;;  %v233_v4 = vld [vmem:[%s1891_s1 + $0x128] sm:$0xff]  ;;  %v234_v23 = vld [vmem:[%s1891_s1 + $0x130] sm:$0xff]  ;;  %vm468_vm2 = vcmask 1043456   ;;  %vm452_vm3 = vcmask 64512  }
  0x15   : > { %v256_v3 = vpack.c.bf16 %v232_v1, %v220_v0  ;;  %v196_v5 = vld [vmem:[%s1891_s1] sm:$0xff]  ;;  %v257_v7 = vpack.c.bf16 %v233_v4, %v221_v2  ;;  %v197_v8 = vld [vmem:[%s1891_s1 + $0x8] sm:$0xff]  ;;  %s1144_s9 = sshll.u32 %s190_s23, 3  ;;  %v258_v25 = vpack.c.bf16 %v234_v23, %v222_v22  ;;  %v198_v26 = vld [vmem:[%s1891_s1 + $0x10] sm:$0xff]  ;;  %s1077_s23 = sshll.u32 %s188_s29, 4  ;;  %s1078_s23 = int_to_ptr.vmem [resolvable:$true] %s1077_s23 }
  0x16   : > { %v208_v6 = vld [vmem:[%s1891_s1 + $0x60] sm:$0xff]  ;;  %v209_v9 = vld [vmem:[%s1891_s1 + $0x68] sm:$0xff]  ;;  %s192_s28 = scalar_lea.vmem %s1890_s0, %s1144_s9  ;;  %v210_v27 = vld [vmem:[%s1891_s1 + $0x70] sm:$0xff]  ;;  %s1324_s9 = smov 64  }
  0x17   : > { %v224_v10 = vld [vmem:[%s1891_s1 + $0xe0] sm:$0xff]  ;;  %278 = vmatpush.bf16.msra.mxu0 %v256_v3  ;;  %v244_v11 = vpack.c.bf16 %v208_v6, %v196_v5  ;;  %v225_v13 = vld [vmem:[%s1891_s1 + $0xe8] sm:$0xff]  ;;  %291 = vmatpush.bf16.msra.mxu1 %v257_v7  ;;  %v245_v15 = vpack.c.bf16 %v209_v9, %v197_v8  ;;  %v223_v29 = vld [vmem:[%s1891_s1 + $0xd8] sm:$0xff]  ;;  %v246_v38 = vpack.c.bf16 %v210_v27, %v198_v26 }
  0x18   : > { %v236_v12 = vld [vmem:[%s1891_s1 + $0x140] sm:$0xff]  ;;  %v237_v14 = vld [vmem:[%s1891_s1 + $0x148] sm:$0xff]  ;;  %v235_v30 = vld [vmem:[%s1891_s1 + $0x138] sm:$0xff]  ;;  %304 = vmatpush.bf16.msra.mxu2 %v258_v25 }
  0x19   : > { %v260_v16 = vpack.c.bf16 %v236_v12, %v224_v10  ;;  %v200_v17 = vld [vmem:[%s1891_s1 + $0x20] sm:$0xff]  ;;  %v201_v19 = vld [vmem:[%s1891_s1 + $0x28] sm:$0xff]  ;;  %v261_v20 = vpack.c.bf16 %v237_v14, %v225_v13  ;;  %v199_v31 = vld [vmem:[%s1891_s1 + $0x18] sm:$0xff]  ;;  %v259_v33 = vpack.c.bf16 %v235_v30, %v223_v29 }
  0x1a   : > { %v212_v18 = vld [vmem:[%s1891_s1 + $0x80] sm:$0xff]  ;;  %v213_v21 = vld [vmem:[%s1891_s1 + $0x88] sm:$0xff]  ;;  %v211_v34 = vld [vmem:[%s1891_s1 + $0x78] sm:$0xff] }
  0x1b   : > { %v194_v24 = vld [vmem:[%s192_s28] sm:$0xff]  ;;  %279 = vmatpush.bf16.msra.mxu0 %v244_v11  ;;  %292 = vmatpush.bf16.msra.mxu1 %v245_v15  ;;  %v248_v32 = vpack.c.bf16 %v212_v18, %v200_v17  ;;  %v226_v35 = vld [vmem:[%s1891_s1 + $0xf0] sm:$0xff]  ;;  %v249_v37 = vpack.c.bf16 %v213_v21, %v201_v19  ;;  %v227_v39 = vld [vmem:[%s1891_s1 + $0xf8] sm:$0xff]  ;;  %v247_v40 = vpack.c.bf16 %v211_v34, %v199_v31 }
  0x1c   : > { %v1463_v28 = vpack.c.bf16 %v194_v24, %v194_v24  ;;  %v238_v36 = vld [vmem:[%s1891_s1 + $0x150] sm:$0xff]  ;;  %317 = vmatpush.bf16.msra.mxu3 %v259_v33  ;;  %v239_v42 = vld [vmem:[%s1891_s1 + $0x158] sm:$0xff]  ;;  %305 = vmatpush.bf16.msra.mxu2 %v246_v38  ;;  %v228_v50 = vld [vmem:[%s1891_s1 + $0x100] sm:$0xff] }
  0x1d   : > { %v262_v41 = vpack.c.bf16 %v238_v36, %v226_v35  ;;  %v202_v43 = vld [vmem:[%s1891_s1 + $0x30] sm:$0xff]  ;;  %v263_v45 = vpack.c.bf16 %v239_v42, %v227_v39  ;;  %v203_v46 = vld [vmem:[%s1891_s1 + $0x38] sm:$0xff]  ;;  %v240_v51 = vld [vmem:[%s1891_s1 + $0x160] sm:$0xff] }
  0x1e   : > { %1145 = vmatmul.msk.bf16.vlgmr.msra.gmra.mxu0 %vm268_vm0, %v1463_v28  ;;  %1146 = vmatmul.msk.bf16.vlgmr.msra.gmra.mxu1 %vm268_vm0, %v1463_v28  ;;  %v214_v44 = vld [vmem:[%s1891_s1 + $0x90] sm:$0xff]  ;;  %v215_v47 = vld [vmem:[%s1891_s1 + $0x98] sm:$0xff]  ;;  %v264_v52 = vpack.c.bf16 %v240_v51, %v228_v50  ;;  %v204_v53 = vld [vmem:[%s1891_s1 + $0x40] sm:$0xff] }
  0x1f   : > { %330 = vmatpush.bf16.msrb.mxu0 %v260_v16  ;;  %343 = vmatpush.bf16.msrb.mxu1 %v261_v20  ;;  %v250_v48 = vpack.c.bf16 %v214_v44, %v202_v43  ;;  %v251_v49 = vpack.c.bf16 %v215_v47, %v203_v46  ;;  %v216_v54 = vld [vmem:[%s1891_s1 + $0xa0] sm:$0xff]  ;;  %v230_v20 = vld [vmem:[%s1891_s1 + $0x110] sm:$0xff]  ;;  %v241_v46 = vld [vmem:[%s1891_s1 + $0x168] sm:$0xff] }
  0x20   : > { %318 = vmatpush.bf16.msra.mxu3 %v247_v40  ;;  %356 = vmatpush.bf16.msrb.mxu2 %v262_v41  ;;  %v252_v55 = vpack.c.bf16 %v216_v54, %v204_v53  ;;  %v242_v21 = vld [vmem:[%s1891_s1 + $0x170] sm:$0xff]  ;;  %v205_v47 = vld [vmem:[%s1891_s1 + $0x48] sm:$0xff] }
  0x21   : > { %1147 = vmatmul.msk.bf16.vlgmr.msra.gmra.mxu2 %vm268_vm0, %v1463_v28  ;;  %v206_v22 = vld [vmem:[%s1891_s1 + $0x50] sm:$0xff]  ;;  %v266_v23 = vpack.c.bf16 %v242_v21, %v230_v20 }
  0x22   : > { %v218_v24 = vld [vmem:[%s1891_s1 + $0xb0] sm:$0xff] }
  0x23   : > { %331 = vmatpush.bf16.msrb.mxu0 %v248_v32  ;;  %344 = vmatpush.bf16.msrb.mxu1 %v249_v37  ;;  %v254_v25 = vpack.c.bf16 %v218_v24, %v206_v22 }
  0x24   : > { %369 = vmatpush.bf16.msrb.mxu3 %v263_v45  ;;  %357 = vmatpush.bf16.msrb.mxu2 %v250_v48  ;;  %v229_v45 = vld [vmem:[%s1891_s1 + $0x108] sm:$0xff] }
  0x25   : > { %1148 = vmatmul.msk.bf16.vlgmr.msra.gmra.mxu3 %vm268_vm0, %v1463_v28  ;;  %v265_v48 = vpack.c.bf16 %v241_v46, %v229_v45 }
  0x27   : > { %382 = vmatpush.bf16.msra.mxu0 %v264_v52  ;;  %395 = vmatpush.bf16.msra.mxu1 %v265_v48 }
  0x28   : > { %370 = vmatpush.bf16.msrb.mxu3 %v251_v49  ;;  %408 = vmatpush.bf16.msra.mxu2 %v266_v23  ;;  %v217_v49 = vld [vmem:[%s1891_s1 + $0xa8] sm:$0xff] }
  0x29   : > { %v253_v50 = vpack.c.bf16 %v217_v49, %v205_v47 }
  0x2b   : > { %383 = vmatpush.bf16.msra.mxu0 %v252_v55  ;;  %396 = vmatpush.bf16.msra.mxu1 %v253_v50 }
  0x2c   : > { %409 = vmatpush.bf16.msra.mxu2 %v254_v25 }
  0x2e   : > { %1149 = vmatmul.msk.bf16.vlgmr.msrb.gmra.mxu0 %vm268_vm0, %v1463_v28  ;;  %1150 = vmatmul.msk.bf16.vlgmr.msrb.gmra.mxu1 %vm268_vm0, %v1463_v28 }
  0x31   : > { %1151 = vmatmul.msk.bf16.vlgmr.msrb.gmra.mxu2 %vm268_vm0, %v1463_v28 }
  0x35   : > { %1152 = vmatmul.msk.bf16.vlgmr.msrb.gmra.mxu3 %vm268_vm0, %v1463_v28 }
  0x3e   : > { %1153 = vmatmul.msk.bf16.vlgmr.msra.gmra.mxu0 %vm268_vm0, %v1463_v28  ;;  %1154 = vmatmul.msk.bf16.vlgmr.msra.gmra.mxu1 %vm268_vm0, %v1463_v28 }
  0x41   : > { %1155 = vmatmul.msk.bf16.vlgmr.msra.gmra.mxu2 %vm268_vm0, %v1463_v28 }
  0x9b   : > { %v281_v56 = vpop.f32.mrf.mxu0  ;;  %v294_v57 = vpop.f32.mrf.mxu1 }
  0x9c   : > { %v428_v7 = vpack.c.bf16 %v281_v56, %v281_v56  ;;  %v545_v9 = vpack.c.bf16 %v294_v57, %v294_v57 }
  0xa3   : > { %v283_v58 = vpop.f32.mrf.mxu0  ;;  %v296_v59 = vpop.f32.mrf.mxu1 }
  0xa4   : > { %v307_v60 = vpop.f32.mrf.mxu2 }
  0xa5   : > { %v659_v16 = vpack.c.bf16 %v307_v60, %v307_v60 }
  0xa8   : > { %v320_v61 = vpop.f32.mrf.mxu3 }
  0xa9   : > { %v773_v15 = vpack.c.bf16 %v320_v61, %v320_v61  ;;  %v231_v61 = vld [vmem:[%s1891_s1 + $0x118] sm:$0xff] }
  0xab   : > { %v333_v62 = vpop.f32.mrf.mxu0  ;;  %v346_v0 = vpop.f32.mrf.mxu1 }
  0xac   : > { %v429_v63 = vpack.c.bf16 %v333_v62, %v333_v62  ;;  %v546_v1 = vpack.c.bf16 %v346_v0, %v346_v0  ;;  %v309_v4 = vpop.f32.mrf.mxu2  ;;  %v243_v62 = vld [vmem:[%s1891_s1 + $0x178] sm:$0xff] }
  0xae   : > { %v436_v2 = vsel %vm431_vm1, %v429_v63, 0  ;;  %489 = vrot.lane.b32.xlu0 %v429_v63, %s1324_s9  ;;  %v552_v3 = vsel %vm431_vm1, %v546_v1, 0  ;;  %603 = vrot.lane.b32.xlu1 %v546_v1, %s1324_s9  ;;  %v267_v63 = vpack.c.bf16 %v243_v62, %v231_v61  ;;  %v207_v1 = vld [vmem:[%s1891_s1 + $0x58] sm:$0xff] }
  0xaf   : > { %445 = vmatpush.bf16.xpose.msrb.mxu0 %v436_v2  ;;  %v219_v2 = vld [vmem:[%s1891_s1 + $0xb8] sm:$0xff] }
  0xb0   : > { %v322_v5 = vpop.f32.mrf.mxu3  ;;  %421 = vmatpush.bf16.msra.mxu3 %v267_v63 }
  0xb3   : > { %v335_v6 = vpop.f32.mrf.mxu0  ;;  %v348_v8 = vpop.f32.mrf.mxu1 }
  0xb4   : > { %v359_v10 = vpop.f32.mrf.mxu2 }
  0xb5   : > { %v660_v11 = vpack.c.bf16 %v359_v10, %v359_v10 }
  0xb6   : > { %486 = vrot.lane.b32.xlu0 %v428_v7, %s1324_s9  ;;  %1157 = vmatmul.msk.bf16.vlgmr.msrb.gmra.mxu0 %vm431_vm1, %v428_v7 }
  0xb7   : > { %561 = vmatpush.bf16.xpose.msra.mxu0 %v552_v3  ;;  %600 = vrot.lane.b32.xlu1 %v545_v9, %s1324_s9  ;;  %v666_v13 = vsel %vm431_vm1, %v660_v11, 0  ;;  %v255_v3 = vpack.c.bf16 %v219_v2, %v207_v1 }
  0xb8   : > { %v372_v12 = vpop.f32.mrf.mxu3  ;;  %717 = vrot.lane.b32.xlu2 %v660_v11, %s1324_s9 }
  0xb9   : > { %v774_v14 = vpack.c.bf16 %v372_v12, %v372_v12  ;;  %422 = vmatpush.bf16.msra.mxu3 %v255_v3 }
  0xbb   : > { %v780_v19 = vsel %vm431_vm1, %v774_v14, 0  ;;  %v385_v26 = vpop.f32.mrf.mxu0 }
  0xbc   : > { %v361_v17 = vpop.f32.mrf.mxu2  ;;  %v430_v27 = vpack.c.bf16 %v385_v26, %v385_v26  ;;  %1156 = vmatmul.msk.bf16.vlgmr.msra.gmra.mxu3 %vm268_vm0, %v1463_v28 }
  0xbe   : > { %831 = vrot.lane.b32.xlu0 %v774_v14, %s1324_s9  ;;  %v470_v51 = vsel %vm468_vm2, %v430_v27, 0 }
  0xbf   : > { %675 = vmatpush.bf16.xpose.msrb.mxu0 %v666_v13  ;;  %828 = vrot.lane.b32.xlu1 %v773_v15, %s1324_s9 }
  0xc0   : > { %v374_v18 = vpop.f32.mrf.mxu3  ;;  %714 = vrot.lane.b32.xlu2 %v659_v16, %s1324_s9  ;;  %479 = vmatpush.bf16.msrb.mxu1 %v470_v51 }
  0xc3   : > { %v387_v29 = vpop.f32.mrf.mxu0 }
  0xc4   : > { %v411_v53 = vpop.f32.mrf.mxu2 }
  0xc5   : > { %v1614_v26 = vpack.c.bf16 %v411_v53, %v411_v53 }
  0xc6   : > { %1161 = vmatmul.msk.bf16.vlgmr.msra.gmra.mxu0 %vm431_vm1, %v545_v9 }
  0xc7   : > { %789 = vmatpush.bf16.xpose.msra.mxu0 %v780_v19  ;;  %524 = vrot.lane.b32.xlu1 %v430_v27, %s1324_s9  ;;  %v398_v27 = vpop.f32.mrf.mxu1 }
  0xcc   : > { %v413_v56 = vpop.f32.mrf.mxu2 }
  0xcf   : > { %v400_v29 = vpop.f32.mrf.mxu1 }
  0xd6   : > { %1165 = vmatmul.msk.bf16.vlgmr.msrb.gmra.mxu0 %vm431_vm1, %v659_v16 }
  0xe6   : > { %1169 = vmatmul.msk.bf16.vlgmr.msra.gmra.mxu0 %vm431_vm1, %v773_v15 }
 0x112   : > { %v718_v34 = vpop.permute.xlu2 %717 }
 0x113   : > { %v723_v35 = vsel %vm431_vm1, %v718_v34, 0 }
 0x11a   : > { %v715_v43 = vpop.permute.xlu2 %714 }
 0x120   : > { %v490_v30 = vpop.permute.xlu0 %489  ;;  %v604_v31 = vpop.permute.xlu1 %603 }
 0x121   : > { %v495_v32 = vsel %vm431_vm1, %v490_v30, 0  ;;  %v609_v33 = vsel %vm431_vm1, %v604_v31, 0  ;;  %v547_v30 = vpack.c.bf16 %v398_v27, %v398_v27 }
 0x122   : > { %504 = vmatpush.bf16.xpose.msrb.mxu2 %v495_v32 }
 0x123   : > { %v584_v31 = vsel %vm468_vm2, %v547_v30, 0 }
 0x124   : > { %593 = vmatpush.bf16.msra.mxu1 %v584_v31 }
 0x128   : > { %v487_v36 = vpop.permute.xlu0 %486 }
 0x129   : > { %1159 = vmatmul.msk.bf16.vlgmr.msrb.gmra.mxu2 %vm431_vm1, %v487_v36  ;;  %v601_v40 = vpop.permute.xlu1 %600 }
 0x12a   : > { %618 = vmatpush.bf16.xpose.msra.mxu2 %v609_v33 }
 0x130   : > { %v832_v38 = vpop.permute.xlu0 %831 }
 0x131   : > { %v837_v39 = vsel %vm431_vm1, %v832_v38, 0  ;;  %v829_v54 = vpop.permute.xlu1 %828 }
 0x132   : > { %732 = vmatpush.bf16.xpose.msrb.mxu2 %v723_v35 }
 0x133   : > { %v447_v37 = vpop.f32.mrf.mxu0 }
 0x134   : > { %v451_v4 = vmul.f32 0.125, %v447_v37 }
 0x136   : > { %v453_v6 = vsel %vm452_vm3, %v451_v4, -inf }
 0x139   : > { %1163 = vmatmul.msk.bf16.vlgmr.msra.gmra.mxu2 %vm431_vm1, %v601_v40  ;;  %v525_v15 = vpop.permute.xlu1 %524 }
 0x13a   : > { %846 = vmatpush.bf16.xpose.msra.mxu2 %v837_v39  ;;  %v530_v28 = vsel %vm468_vm2, %v525_v15, 0 }
 0x13b   : > { %v449_v41 = vpop.f32.mrf.mxu0  ;;  %539 = vmatpush.bf16.msrb.mxu3 %v530_v28 }
 0x13f   : > { %v424_v45 = vpop.f32.mrf.mxu3 }
 0x143   : > { %v563_v42 = vpop.f32.mrf.mxu0 }
 0x144   : > { %v1601_v7 = vmul.f32 0.125, %v563_v42 }
 0x146   : > { %v568_v11 = vsel %vm452_vm3, %v1601_v7, -inf }
 0x147   : > { %v426_v51 = vpop.f32.mrf.mxu3 }
 0x149   : > { %1167 = vmatmul.msk.bf16.vlgmr.msrb.gmra.mxu2 %vm431_vm1, %v715_v43 }
 0x14b   : > { %v565_v44 = vpop.f32.mrf.mxu0 }
 0x153   : > { %v677_v52 = vpop.f32.mrf.mxu0 }
 0x154   : > { %v681_v12 = vmul.f32 0.125, %v677_v52 }
 0x156   : > { %v682_v14 = vsel %vm452_vm3, %v681_v12, -inf }
 0x159   : > { %1171 = vmatmul.msk.bf16.vlgmr.msra.gmra.mxu2 %vm431_vm1, %v829_v54 }
 0x15b   : > { %v679_v55 = vpop.f32.mrf.mxu0 }
 0x163   : > { %v791_v57 = vpop.f32.mrf.mxu0 }
 0x164   : > { %v1608_v16 = vmul.f32 0.125, %v791_v57 }
 0x166   : > { %v796_v20 = vsel %vm452_vm3, %v1608_v16, -inf }
 0x16b   : > { %v793_v58 = vpop.f32.mrf.mxu0 }
 0x1ac   : > { %v506_v59 = vpop.f32.mrf.mxu2 }
 0x1ad   : > { %v510_v60 = vmul.f32 0.125, %v506_v59 }
 0x1af   : > { %v511_v0 = vsel %vm452_vm3, %v510_v60, -inf }
 0x1b0   : > { %512 = vmax.xlane.f32.xlu2 %v511_v0 }
 0x1b4   : > { %v508_v5 = vpop.f32.mrf.mxu2 }
 0x1b8   : > { %454 = vmax.xlane.f32.xlu2 %v453_v6 }
 0x1bc   : > { %v620_v8 = vpop.f32.mrf.mxu2 }
 0x1bd   : > { %v624_v9 = vmul.f32 0.125, %v620_v8 }
 0x1bf   : > { %v625_v10 = vsel %vm452_vm3, %v624_v9, -inf }
 0x1c0   : > { %626 = vmax.xlane.f32.xlu0 %v625_v10  ;;  %569 = vmax.xlane.f32.xlu2 %v568_v11 }
 0x1c4   : > { %v622_v13 = vpop.f32.mrf.mxu2 }
 0x1c8   : > { %683 = vmax.xlane.f32.xlu0 %v682_v14 }
 0x1cc   : > { %v734_v17 = vpop.f32.mrf.mxu2 }
 0x1cd   : > { %v738_v18 = vmul.f32 0.125, %v734_v17 }
 0x1cf   : > { %v739_v19 = vsel %vm452_vm3, %v738_v18, -inf }
 0x1d0   : > { %740 = vmax.xlane.f32.xlu1 %v739_v19  ;;  %797 = vmax.xlane.f32.xlu0 %v796_v20 }
 0x1d4   : > { %v736_v21 = vpop.f32.mrf.mxu2 }
 0x1dc   : > { %v848_v22 = vpop.f32.mrf.mxu2 }
 0x1dd   : > { %v852_v23 = vmul.f32 0.125, %v848_v22 }
 0x1df   : > { %v853_v24 = vsel %vm452_vm3, %v852_v23, -inf }
 0x1e0   : > { %854 = vmax.xlane.f32.xlu2 %v853_v24 }
 0x1e4   : > { %v850_v25 = vpop.f32.mrf.mxu2 }
 0x1e9   : > { %752 = vrot.lane.b32.xlu1 %v1614_v26, %s1324_s9 }
 0x1f8   : > { %638 = vrot.lane.b32.xlu2 %v547_v30, %s1324_s9 }
 0x223   : > { %v513_v32 = vpop.xlane.xlu2 %512 }
 0x224   : > { %v514_v33 = vsub.f32 %v510_v60, %v513_v32 }
 0x226   : > { %v515_v34 = vmul.f32 1.442695, %v514_v33 }
 0x228   : > { %1228 = vpow2.f32 %v515_v34 }
 0x22b   : > { %v455_v35 = vpop.xlane.xlu2 %454 }
 0x22c   : > { %v456_v36 = vsub.f32 %v451_v4, %v455_v35  ;;  %v775_v4 = vpack.c.bf16 %v424_v45, %v424_v45 }
 0x22e   : > { %v1229_v37 = vpop.eup %1228  ;;  %v457_v38 = vmul.f32 1.442695, %v456_v36 }
 0x22f   : > { %v517_v39 = vsel %vm452_vm3, %v1229_v37, 0.0 }
 0x230   : > { %1230 = vpow2.f32 %v457_v38  ;;  %518 = vadd.xlane.f32.xlu0 %v517_v39 }
 0x233   : > { %v627_v40 = vpop.xlane.xlu0 %626  ;;  %v570_v57 = vpop.xlane.xlu2 %569 }
 0x234   : > { %v628_v41 = vsub.f32 %v624_v9, %v627_v40  ;;  %v571_v10 = vsub.f32 %v1601_v7, %v570_v57 }
 0x236   : > { %v1231_v42 = vpop.eup %1230  ;;  %v629_v43 = vmul.f32 1.442695, %v628_v41  ;;  %v572_v11 = vmul.f32 1.442695, %v571_v10 }
 0x237   : > { %v459_v44 = vsel %vm452_vm3, %v1231_v42, 0.0 }
 0x238   : > { %1232 = vpow2.f32 %v629_v43  ;;  %460 = vadd.xlane.f32.xlu1 %v459_v44  ;;  %v812_v43 = vsel %vm468_vm2, %v775_v4, 0 }
 0x23b   : > { %v684_v46 = vpop.xlane.xlu0 %683 }
 0x23c   : > { %v685_v47 = vsub.f32 %v681_v12, %v684_v46 }
 0x23e   : > { %v1233_v48 = vpop.eup %1232  ;;  %v686_v49 = vmul.f32 1.442695, %v685_v47 }
 0x23f   : > { %v631_v50 = vsel %vm452_vm3, %v1233_v48, 0.0 }
 0x240   : > { %1234 = vpow2.f32 %v686_v49  ;;  %632 = vadd.xlane.f32.xlu0 %v631_v50 }
 0x243   : > { %v741_v52 = vpop.xlane.xlu1 %740  ;;  %v798_v60 = vpop.xlane.xlu0 %797 }
 0x244   : > { %v742_v53 = vsub.f32 %v738_v18, %v741_v52  ;;  %v799_v63 = vsub.f32 %v1608_v16, %v798_v60  ;;  %v941_v60 = vld [vmem:[%s1892_s2 + $0xf0] sm:$0xff] }
 0x246   : > { %v1623_v54 = vpop.eup %1234  ;;  %v743_v55 = vmul.f32 1.442695, %v742_v53  ;;  %v800_v1 = vmul.f32 1.442695, %v799_v63 }
 0x247   : > { %v688_v56 = vsel %vm452_vm3, %v1623_v54, 0.0 }
 0x248   : > { %1236 = vpow2.f32 %v743_v55  ;;  %689 = vadd.xlane.f32.xlu1 %v688_v56 }
 0x24e   : > { %v1237_v58 = vpop.eup %1236 }
 0x24f   : > { %v745_v59 = vsel %vm452_vm3, %v1237_v58, 0.0 }
 0x250   : > { %746 = vadd.xlane.f32.xlu0 %v745_v59  ;;  %v926_v59 = vld [vmem:[%s1892_s2 + $0x78] sm:$0xff] }
 0x253   : > { %v855_v61 = vpop.xlane.xlu2 %854 }
 0x254   : > { %v856_v62 = vsub.f32 %v852_v23, %v855_v61  ;;  %v698_v23 = vsel %vm468_vm2, %v1614_v26, 0 }
 0x256   : > { %v857_v0 = vmul.f32 1.442695, %v856_v62  ;;  %v942_v62 = vld [vmem:[%s1892_s2 + $0xf8] sm:$0xff] }
 0x257   : > { %v990_v63 = vpack.c.bf16 %v942_v62, %v941_v60  ;;  %v953_v62 = vld [vmem:[%s1892_s2 + $0x150] sm:$0xff] }
 0x258   : > { %1238 = vpow2.f32 %v857_v0 }
 0x259   : > { %1240 = vpow2.f32 %v800_v1 }
 0x25a   : > { %1242 = vpow2.f32 %v572_v11 }
 0x25b   : > { %v639_v8 = vpop.permute.xlu2 %638  ;;  %v753_v14 = vpop.permute.xlu1 %752 }
 0x25c   : > { %v644_v9 = vsel %vm468_vm2, %v639_v8, 0  ;;  %v758_v19 = vsel %vm468_vm2, %v753_v14, 0  ;;  %v937_v14 = vld [vmem:[%s1892_s2 + $0xd0] sm:$0xff] }
 0x25d   : > { %653 = vmatpush.bf16.msra.mxu3 %v644_v9  ;;  %v940_v9 = vld [vmem:[%s1892_s2 + $0xe8] sm:$0xff] }
 0x25e   : > { %v1239_v2 = vpop.eup %1238 }
 0x25f   : > { %v859_v3 = vsel %vm452_vm3, %v1239_v2, 0.0  ;;  %v1630_v5 = vpop.eup %1240 }
 0x260   : > { %860 = vadd.xlane.f32.xlu2 %v859_v3  ;;  %v802_v6 = vsel %vm452_vm3, %v1630_v5, 0.0  ;;  %v1243_v12 = vpop.eup %1242 }
 0x261   : > { %v574_v13 = vsel %vm452_vm3, %v1243_v12, 0.0 }
 0x264   : > { %866 = vrot.lane.b32.xlu0 %v775_v4, %s1324_s9  ;;  %v923_v4 = vld [vmem:[%s1892_s2 + $0x60] sm:$0xff] }
 0x268   : > { %803 = vadd.xlane.f32.xlu2 %v802_v6  ;;  %v939_v6 = vld [vmem:[%s1892_s2 + $0xe0] sm:$0xff] }
 0x269   : > { %v989_v11 = vpack.c.bf16 %v940_v9, %v939_v6  ;;  %v952_v6 = vld [vmem:[%s1892_s2 + $0x148] sm:$0xff] }
 0x26a   : > { %v968_v9 = vld [vmem:[%s1892_s2 + $0x1c8] sm:$0xff] }
 0x28e   : > { %575 = vadd.xlane.f32.xlu0 %v574_v13  ;;  %v922_v13 = vld [vmem:[%s1892_s2 + $0x58] sm:$0xff] }
 0x2a3   : > { %v519_v15 = vpop.xlane.xlu0 %518 }
 0x2a4   : > { %1244 = vrcp.f32 %v519_v15 }
 0x2aa   : > { %v1245_v28 = vpop.eup %1244 }
 0x2ab   : > { %v521_v16 = vmul.f32 %v1245_v28, %v1229_v37  ;;  %v461_v17 = vpop.xlane.xlu1 %460  ;;  %v938_v28 = vld [vmem:[%s1892_s2 + $0xd8] sm:$0xff] }
 0x2ac   : > { %1246 = vrcp.f32 %v461_v17  ;;  %v919_v17 = vld [vmem:[%s1892_s2 + $0x40] sm:$0xff] }
 0x2ad   : > { %v522_v18 = vpack.c.bf16 %v521_v16, %v521_v16  ;;  %v988_v16 = vpack.c.bf16 %v938_v28, %v937_v14  ;;  %v950_v14 = vld [vmem:[%s1892_s2 + $0x138] sm:$0xff] }
 0x2ae   : > { %v966_v28 = vld [vmem:[%s1892_s2 + $0x1b8] sm:$0xff] }
 0x2af   : > { %1160 = vmatmul.msk.bf16.vlgmr.msrb.gmra.mxu3 %vm452_vm3, %v522_v18  ;;  %v920_v18 = vld [vmem:[%s1892_s2 + $0x48] sm:$0xff] }
 0x2b0   : > { %767 = vmatpush.bf16.msrb.mxu3 %v758_v19  ;;  %v935_v19 = vld [vmem:[%s1892_s2 + $0xc0] sm:$0xff] }
 0x2b2   : > { %v1247_v7 = vpop.eup %1246 }
 0x2b3   : > { %v463_v20 = vmul.f32 %v1247_v7, %v1231_v42  ;;  %v633_v21 = vpop.xlane.xlu0 %632  ;;  %v979_v7 = vpack.c.bf16 %v920_v18, %v919_v17 }
 0x2b4   : > { %1248 = vrcp.f32 %v633_v21 }
 0x2b5   : > { %v464_v22 = vpack.c.bf16 %v463_v20, %v463_v20  ;;  %v936_v20 = vld [vmem:[%s1892_s2 + $0xc8] sm:$0xff] }
 0x2b6   : > { %v987_v21 = vpack.c.bf16 %v936_v20, %v935_v19 }
 0x2b7   : > { %1158 = vmatmul.msk.bf16.vlgmr.msrb.gmra.mxu1 %vm452_vm3, %v464_v22  ;;  %v917_v22 = vld [vmem:[%s1892_s2 + $0x30] sm:$0xff] }
 0x2b8   : > { %707 = vmatpush.bf16.msrb.mxu1 %v698_v23  ;;  %v918_v23 = vld [vmem:[%s1892_s2 + $0x38] sm:$0xff] }
 0x2ba   : > { %v1249_v24 = vpop.eup %1248 }
 0x2bb   : > { %v635_v25 = vmul.f32 %v1249_v24, %v1233_v48  ;;  %v690_v41 = vpop.xlane.xlu1 %689  ;;  %v933_v24 = vld [vmem:[%s1892_s2 + $0xb0] sm:$0xff] }
 0x2bd   : > { %v636_v27 = vpack.c.bf16 %v635_v25, %v635_v25  ;;  %v978_v25 = vpack.c.bf16 %v918_v23, %v917_v22  ;;  %v947_v22 = vld [vmem:[%s1892_s2 + $0x120] sm:$0xff] }
 0x2bf   : > { %1164 = vmatmul.msk.bf16.vlgmr.msra.gmra.mxu3 %vm452_vm3, %v636_v27  ;;  %v934_v27 = vld [vmem:[%s1892_s2 + $0xb8] sm:$0xff] }
 0x2c3   : > { %v747_v29 = vpop.xlane.xlu0 %746 }
 0x2c4   : > { %1250 = vrcp.f32 %v747_v29  ;;  %v986_v29 = vpack.c.bf16 %v934_v27, %v933_v24  ;;  %v964_v27 = vld [vmem:[%s1892_s2 + $0x1a8] sm:$0xff] }
 0x2ca   : > { %v1251_v30 = vpop.eup %1250 }
 0x2cb   : > { %v749_v31 = vmul.f32 %v1251_v30, %v1237_v58  ;;  %v925_v58 = vld [vmem:[%s1892_s2 + $0x70] sm:$0xff]  ;;  %v915_v30 = vld [vmem:[%s1892_s2 + $0x20] sm:$0xff] }
 0x2cc   : > { %v982_v61 = vpack.c.bf16 %v926_v59, %v925_v58  ;;  %v971_v58 = vld [vmem:[%s1892_s2 + $0x1e0] sm:$0xff]  ;;  %v972_v59 = vld [vmem:[%s1892_s2 + $0x1e8] sm:$0xff] }
 0x2cd   : > { %v750_v32 = vpack.c.bf16 %v749_v31, %v749_v31  ;;  %v916_v31 = vld [vmem:[%s1892_s2 + $0x28] sm:$0xff] }
 0x2ce   : > { %1011 = vmatpush.bf16.msrb.mxu0 %v982_v61  ;;  %v1005_v61 = vpack.c.bf16 %v972_v59, %v971_v58 }
 0x2cf   : > { %1168 = vmatmul.msk.bf16.vlgmr.msrb.gmra.mxu3 %vm452_vm3, %v750_v32  ;;  %v931_v32 = vld [vmem:[%s1892_s2 + $0xa0] sm:$0xff] }
 0x2d3   : > { %v861_v33 = vpop.xlane.xlu2 %860 }
 0x2d4   : > { %1252 = vrcp.f32 %v861_v33  ;;  %v977_v33 = vpack.c.bf16 %v916_v31, %v915_v30  ;;  %v945_v31 = vld [vmem:[%s1892_s2 + $0x110] sm:$0xff] }
 0x2d6   : > { %v867_v34 = vpop.permute.xlu0 %866 }
 0x2d7   : > { %v872_v26 = vsel %vm468_vm2, %v867_v34, 0  ;;  %v932_v34 = vld [vmem:[%s1892_s2 + $0xa8] sm:$0xff] }
 0x2d8   : > { %881 = vmatpush.bf16.msra.mxu3 %v872_v26  ;;  %v985_v26 = vpack.c.bf16 %v932_v34, %v931_v32  ;;  %v946_v32 = vld [vmem:[%s1892_s2 + $0x118] sm:$0xff] }
 0x2d9   : > { %v962_v34 = vld [vmem:[%s1892_s2 + $0x198] sm:$0xff] }
 0x2da   : > { %v1253_v35 = vpop.eup %1252 }
 0x2db   : > { %v863_v36 = vmul.f32 %v1253_v35, %v1239_v2  ;;  %v804_v47 = vpop.xlane.xlu2 %803  ;;  %v913_v35 = vld [vmem:[%s1892_s2 + $0x10] sm:$0xff] }
 0x2dd   : > { %v864_v37 = vpack.c.bf16 %v863_v36, %v863_v36  ;;  %v914_v36 = vld [vmem:[%s1892_s2 + $0x18] sm:$0xff] }
 0x2df   : > { %1172 = vmatmul.msk.bf16.vlgmr.msra.gmra.mxu3 %vm452_vm3, %v864_v37  ;;  %v929_v37 = vld [vmem:[%s1892_s2 + $0x90] sm:$0xff] }
 0x301   : > { %v576_v38 = vpop.xlane.xlu0 %575 }
 0x302   : > { %1254 = vrcp.f32 %v576_v38  ;;  %v976_v38 = vpack.c.bf16 %v914_v36, %v913_v35  ;;  %v992_v35 = vpack.c.bf16 %v946_v32, %v945_v31 }
 0x303   : > { %1256 = vrcp.f32 %v690_v41  ;;  %v911_v41 = vld [vmem:[%s1892_s2] sm:$0xff] }
 0x304   : > { %1258 = vrcp.f32 %v804_v47 }
 0x308   : > { %v1255_v39 = vpop.eup %1254 }
 0x309   : > { %v578_v40 = vmul.f32 %v1255_v39, %v1243_v12  ;;  %v1257_v44 = vpop.eup %1256  ;;  %v921_v12 = vld [vmem:[%s1892_s2 + $0x50] sm:$0xff]  ;;  %v930_v39 = vld [vmem:[%s1892_s2 + $0x98] sm:$0xff] }
 0x30a   : > { %v692_v45 = vmul.f32 %v1257_v44, %v1623_v54  ;;  %v1259_v48 = vpop.eup %1258  ;;  %v980_v15 = vpack.c.bf16 %v922_v13, %v921_v12  ;;  %v949_v12 = vld [vmem:[%s1892_s2 + $0x130] sm:$0xff] }
 0x30b   : > { %v579_v42 = vpack.c.bf16 %v578_v40, %v578_v40  ;;  %v806_v49 = vmul.f32 %v1259_v48, %v1630_v5  ;;  %v924_v5 = vld [vmem:[%s1892_s2 + $0x68] sm:$0xff]  ;;  %v984_v40 = vpack.c.bf16 %v930_v39, %v929_v37  ;;  %v994_v20 = vpack.c.bf16 %v950_v14, %v949_v12 }
 0x30c   : > { %v693_v46 = vpack.c.bf16 %v692_v45, %v692_v45  ;;  %v981_v8 = vpack.c.bf16 %v924_v5, %v923_v4  ;;  %v928_v45 = vld [vmem:[%s1892_s2 + $0x88] sm:$0xff]  ;;  %v951_v5 = vld [vmem:[%s1892_s2 + $0x140] sm:$0xff] }
 0x30d   : > { %1162 = vmatmul.msk.bf16.vlgmr.msra.gmra.mxu1 %vm452_vm3, %v579_v42  ;;  %v807_v50 = vpack.c.bf16 %v806_v49, %v806_v49  ;;  %v912_v42 = vld [vmem:[%s1892_s2 + $0x8] sm:$0xff]  ;;  %v957_v49 = vld [vmem:[%s1892_s2 + $0x170] sm:$0xff] }
 0x30e   : > { %821 = vmatpush.bf16.msra.mxu1 %v812_v43  ;;  %1012 = vmatpush.bf16.msrb.mxu0 %v981_v8  ;;  %v927_v43 = vld [vmem:[%s1892_s2 + $0x80] sm:$0xff]  ;;  %v975_v44 = vpack.c.bf16 %v912_v42, %v911_v41  ;;  %v944_v39 = vld [vmem:[%s1892_s2 + $0x108] sm:$0xff] }
 0x30f   : > { %v967_v8 = vld [vmem:[%s1892_s2 + $0x1c0] sm:$0xff]  ;;  %v960_v42 = vld [vmem:[%s1892_s2 + $0x188] sm:$0xff] }
 0x312   : > { %1013 = vmatpush.bf16.msrb.mxu0 %v980_v15  ;;  %v965_v15 = vld [vmem:[%s1892_s2 + $0x1b0] sm:$0xff] }
 0x316   : > { %1014 = vmatpush.bf16.msrb.mxu0 %v979_v7 }
 0x31a   : > { %1015 = vmatpush.bf16.msrb.mxu0 %v978_v25  ;;  %v948_v25 = vld [vmem:[%s1892_s2 + $0x128] sm:$0xff] }
 0x31d   : > { %1166 = vmatmul.msk.bf16.vlgmr.msrb.gmra.mxu1 %vm452_vm3, %v693_v46  ;;  %v983_v46 = vpack.c.bf16 %v928_v45, %v927_v43 }
 0x31e   : > { %1024 = vmatpush.bf16.msrb.mxu1 %v990_v63  ;;  %1016 = vmatpush.bf16.msrb.mxu0 %v977_v33  ;;  %v954_v63 = vld [vmem:[%s1892_s2 + $0x158] sm:$0xff]  ;;  %v961_v33 = vld [vmem:[%s1892_s2 + $0x190] sm:$0xff] }
 0x31f   : > { %v1000_v36 = vpack.c.bf16 %v962_v34, %v961_v33 }
 0x322   : > { %1025 = vmatpush.bf16.msrb.mxu1 %v989_v11  ;;  %1017 = vmatpush.bf16.msrb.mxu0 %v976_v38  ;;  %v1003_v11 = vpack.c.bf16 %v968_v9, %v967_v8  ;;  %v943_v38 = vld [vmem:[%s1892_s2 + $0x100] sm:$0xff] }
 0x323   : > { %v991_v41 = vpack.c.bf16 %v944_v39, %v943_v38 }
 0x326   : > { %1026 = vmatpush.bf16.msrb.mxu1 %v988_v16  ;;  %1018 = vmatpush.bf16.msrb.mxu0 %v975_v44 }
 0x32a   : > { %1027 = vmatpush.bf16.msrb.mxu1 %v987_v21  ;;  %v1002_v21 = vpack.c.bf16 %v966_v28, %v965_v15 }
 0x32d   : > { %1170 = vmatmul.msk.bf16.vlgmr.msra.gmra.mxu1 %vm452_vm3, %v807_v50  ;;  %v958_v50 = vld [vmem:[%s1892_s2 + $0x178] sm:$0xff] }
 0x32e   : > { %1028 = vmatpush.bf16.msrb.mxu1 %v986_v29  ;;  %v993_v29 = vpack.c.bf16 %v948_v25, %v947_v22 }
 0x332   : > { %v541_v51 = vpop.f32.mrf.mxu3  ;;  %1029 = vmatpush.bf16.msrb.mxu1 %v985_v26 }
 0x334   : > { %v1653_v52 = vpop.f32.mrf.mxu1 }
 0x336   : > { %1030 = vmatpush.bf16.msrb.mxu1 %v984_v40  ;;  %v959_v40 = vld [vmem:[%s1892_s2 + $0x180] sm:$0xff] }
 0x337   : > { %v999_v43 = vpack.c.bf16 %v960_v42, %v959_v40 }
 0x33a   : > { %v543_v53 = vpop.f32.mrf.mxu3  ;;  %1031 = vmatpush.bf16.msrb.mxu1 %v983_v46 }
 0x33b   : > { %v998_v53 = vpack.c.bf16 %v958_v50, %v957_v49 }
 0x33c   : > { %v483_v55 = vpop.f32.mrf.mxu1 }
 0x33d   : > { %v974_v55 = vld [vmem:[%s1892_s2 + $0x1f8] sm:$0xff]  ;;  %1037 = vmatpush.bf16.msrb.mxu2 %v998_v53 }
 0x342   : > { %v655_v56 = vpop.f32.mrf.mxu3 }
 0x343   : > { %v1222_v57 = vpack.i.bf16 %v655_v56, %v541_v51  ;;  %v973_v51 = vld [vmem:[%s1892_s2 + $0x1f0] sm:$0xff]  ;;  %v955_v56 = vld [vmem:[%s1892_s2 + $0x160] sm:$0xff] }
 0x345   : > { %1223 = vrot.lane.b32.xlu2 %v1222_v57, %s1324_s9  ;;  %v956_v57 = vld [vmem:[%s1892_s2 + $0x168] sm:$0xff] }
 0x346   : > { %v997_v60 = vpack.c.bf16 %v956_v57, %v955_v56  ;;  %v1227_v57 = vld [vmem:[%s1893_s3] ss:$0 sm:$0xff] }
 0x348   : > { %1038 = vmatpush.bf16.msrb.mxu2 %v997_v60 }
 0x34a   : > { %v657_v54 = vpop.f32.mrf.mxu3 }
 0x34b   : > { %v1006_v54 = vpack.c.bf16 %v974_v55, %v973_v51 }
 0x34d   : > { %1050 = vmatpush.bf16.msrb.mxu3 %v1006_v54 }
 0x351   : > { %1051 = vmatpush.bf16.msrb.mxu3 %v1005_v61 }
 0x352   : > { %v769_v0 = vpop.f32.mrf.mxu3 }
 0x35a   : > { %v771_v1 = vpop.f32.mrf.mxu3 }
 0x35b   : > { %v970_v1 = vld [vmem:[%s1892_s2 + $0x1d8] sm:$0xff] }
 0x362   : > { %v883_v2 = vpop.f32.mrf.mxu3 }
 0x363   : > { %v1217_v3 = vpack.i.bf16 %v883_v2, %v769_v0  ;;  %v969_v0 = vld [vmem:[%s1892_s2 + $0x1d0] sm:$0xff]  ;;  %v996_v2 = vpack.c.bf16 %v954_v63, %v953_v62 }
 0x364   : > { %v1004_v4 = vpack.c.bf16 %v970_v1, %v969_v0 }
 0x365   : > { %1218 = vrot.lane.b32.xlu1 %v1217_v3, %s1324_s9  ;;  %1039 = vmatpush.bf16.msrb.mxu2 %v996_v2  ;;  %s1075_s9 = scalar_lea.hbm %s1894_s4, %s1174_s22 }
 0x366   : > { %1052 = vmatpush.bf16.msrb.mxu3 %v1004_v4  ;;  %s1079_s30 = sshll.u32 %s1075_s9, 4  ;;  %s1080_s30 = int_to_ptr.hbm [resolvable:$true] %s1079_s30 }
 0x367   : > { %s1274_s19 = sshra.s32 %s1080_s30, 4  ;;  %s1275_s19 = int_to_ptr.hbm [resolvable:$true] %s1274_s19 }
 0x368   : > { %s1276_s6 = scalar_lea.hbm %s1275_s19, 8  ;;  %p1281_p0 = scmp.lt.s32.totalorder %s1275_s19, %s1894_s4 }
 0x369   : > { %p1277_p11 = scmp.ne.s32.totalorder %s1275_s19, %s1276_s6  ;;  %p1282_p1 = scmp.lt.s32.totalorder %s1280_s10, %s1276_s6 }
 0x36a   : > { %v885_v10 = vpop.f32.mrf.mxu3  ;;  %1053 = vmatpush.bf16.msrb.mxu3 %v1003_v11 }
 0x36b   : > { %v995_v10 = vpack.c.bf16 %v952_v6, %v951_v5  ;;  %p1278_p12 = pnand %p1277_p11, %p1388_p5  ;;  %p1283_p2 = por %p1282_p1, %p1281_p0 }
 0x36d   : > { %1040 = vmatpush.bf16.msrb.mxu2 %v995_v10  ;;  %p1279_p13 = pneg %p1278_p12 }
 0x36e   : > { %1054 = vmatpush.bf16.msrb.mxu3 %v1002_v21 }
 0x36f   : > { %p1284_p3 = pnand %p1283_p2, %p1279_p13 }
 0x371   : > { %1041 = vmatpush.bf16.msrb.mxu2 %v994_v20 }
 0x375   : > { %1042 = vmatpush.bf16.msrb.mxu2 %v993_v29 }
 0x379   : > { %1043 = vmatpush.bf16.msrb.mxu2 %v992_v35 }
 0x37d   : > { %1044 = vmatpush.bf16.msrb.mxu2 %v991_v41 }
 0x38a   : > { %v595_v47 = vpop.f32.mrf.mxu1 }
 0x392   : > { %v597_v48 = vpop.f32.mrf.mxu1 }
 0x39a   : > { %v709_v3 = vpop.f32.mrf.mxu1 }
 0x39f   : > { %v1224_v13 = vpop.permute.xlu2 %1223 }
 0x3a0   : > { %v1226_v16 = vunpack.i.h.bf16 %v1224_v13  ;;  %v1225_v17 = vunpack.i.l.bf16 %v1224_v13 }
 0x3a2   : > { %v903_v18 = vsel %vm431_vm1, %v1653_v52, %v1225_v17  ;;  %v904_v19 = vsel %vm431_vm1, %v595_v47, %v1226_v16  ;;  %v711_v7 = vpop.f32.mrf.mxu1  ;;  %v963_v52 = vld [vmem:[%s1892_s2 + $0x1a0] sm:$0xff] }
 0x3a3   : > { %v907_v23 = vpack.c.bf16 %v903_v18, %v903_v18  ;;  %v908_v24 = vpack.c.bf16 %v904_v19, %v904_v19  ;;  %v1001_v30 = vpack.c.bf16 %v964_v27, %v963_v52 }
 0x3a5   : > { %1019 = vmatmul.bf16.vlgmr.msrb.gmra.mxu0 %v907_v23  ;;  %1032 = vmatmul.bf16.vlgmr.msrb.gmra.mxu1 %v908_v24 }
 0x3a6   : > { %1055 = vmatpush.bf16.msrb.mxu3 %v1001_v30 }
 0x3aa   : > { %v823_v26 = vpop.f32.mrf.mxu1  ;;  %1056 = vmatpush.bf16.msrb.mxu3 %v1000_v36 }
 0x3ae   : > { %1057 = vmatpush.bf16.msrb.mxu3 %v999_v43 }
 0x3b2   : > { %v825_v37 = vpop.f32.mrf.mxu1 }
 0x3d7   : > { %v1219_v44 = vpop.permute.xlu1 %1218 }
 0x3d8   : > { %v1221_v45 = vunpack.i.h.bf16 %v1219_v44  ;;  %v1220_v46 = vunpack.i.l.bf16 %v1219_v44 }
 0x3da   : > { %v905_v47 = vsel %vm431_vm1, %v709_v3, %v1220_v46  ;;  %v906_v48 = vsel %vm431_vm1, %v823_v26, %v1221_v45 }
 0x3db   : > { %v909_v49 = vpack.c.bf16 %v905_v47, %v905_v47  ;;  %v910_v50 = vpack.c.bf16 %v906_v48, %v906_v48 }
 0x3dd   : > { %1045 = vmatmul.bf16.vlgmr.msrb.gmra.mxu2 %v909_v49  ;;  %1058 = vmatmul.bf16.vlgmr.msrb.gmra.mxu3 %v910_v50 }
 0x422   : > { %v1020_v51 = vpop.f32.mrf.mxu0  ;;  %v1033_v53 = vpop.f32.mrf.mxu1 }
 0x423   : > { %v1021_v54 = vadd.f32 %v1227_v57, %v1020_v51 }
 0x425   : > { %v1034_v58 = vadd.f32 %v1033_v53, %v1021_v54 }
 0x42a   : > { %v1022_v55 = vpop.f32.mrf.mxu0  ;;  %v1035_v56 = vpop.f32.mrf.mxu1 }
 0x460   : > { %v1046_v59 = vpop.f32.mrf.mxu2  ;;  %v1059_v60 = vpop.f32.mrf.mxu3 }
 0x461   : > { %v1047_v61 = vadd.f32 %v1046_v59, %v1034_v58 }
 0x463   : > { %v1060_v62 = vadd.f32 %v1059_v60, %v1047_v61 }
 0x465   : > { %1063 = vst.msk [vmem:[%s188_s29] sm:$0xff] %vm268_vm0, %v1060_v62 }
 0x466   : > { %1287 = shalt.err (!%p1284_p3)
}
 0x467   : > { %1177 = dma.vmem_to_hbm [thread:$0]  (%p1388_p5), %s1078_s23, 128, %s1080_s30, %s1065_s5  }
 0x468   : > { %v1048_v63 = vpop.f32.mrf.mxu2  ;;  %v1061_v0 = vpop.f32.mrf.mxu3 }
 0x469 PF: > { %p1183_p4 = scmp.ge.s32.totalorder %s1322_s18, 2  ;;  %s1091_s13 = sand.u32 1, %s1310_s15  }
 0x46a   : > { %s1092_s14 = scalar_lea.sflag [#allocation3], %s1091_s13 }
 0x46b   : > { %p1180_p7 = pnand %p1183_p4, %p1392_p6 }
 0x46d   : > { %p1181_p8 = pneg %p1180_p7 }
 0x46f   : > { %1305 = dma.done.wait (%p1181_p8), %s1092_s14, 128  }
 0x470   : > { %1307 = vsyncadd (%p1181_p8), %s1092_s14, 4294967168  ;;  %p14_p5 = scmp.ge.s32.totalorder %s1375_s21, 4   ;;  %s1897_s15 = smov %s1314_s16 }
 0x471   : > { %s1898_s16 = smov %s1318_s17  ;;  %s1899_s17 = smov %s1386_s24 }
 0x472   : > { %s1900_s18 = smov %s1375_s21  ;;  %16 = sbr.rel (!%p14_p5) target bundleno = 3 (0x3), region = 71 }
 0x477   :  { %1098 = vsyncpa [#allocation3], 1 }
 0x478   :  { %1100 = vsyncpa [#allocation3 + $0x1], 1 }

</bundles_post_ra>
